<compile_context>
chip_gen: v5e
topology: v5e:2x2
jax: 0.10.0
libtpu: 0.0.40
codegen_flags: <defaults>
</compile_context>

<pallas_src>
from functools import partial

import jax
import jax.numpy as jnp
from jax.experimental import pallas as pl
from jax.experimental.pallas import tpu as pltpu


_LANES = 1024          # lane-dense slab width (multiple of 128)
_MAX_TILE_ROWS = 256   # (256, 1024) f32 tile = 1 MiB per buffer


# ----------------------------- kernels ---------------------------------------

def _ewgs_fwd_kernel(x_ref, y_ref):
    y_ref[...] = jnp.round(x_ref[...])


def _ewgs_bwd_kernel(delta_ref, x_ref, g_ref, gx_ref):
    x = x_ref[...]
    g = g_ref[...]
    diff = x - jnp.round(x)                    # recomputed residual
    gx_ref[...] = g + delta_ref[0] * jnp.abs(g) * diff


# ------------------------- slab / tiling helpers ------------------------------

def _plan(total):
    """Static plan: padded row count (multiple of tile rows) and tile rows."""
    rows = -(-total // _LANES)          # ceil-div
    rows = -(-rows // 8) * 8            # sublane multiple (8, 128) tiling
    tr = min(_MAX_TILE_ROWS, rows)
    rows = -(-rows // tr) * tr          # whole number of tiles
    return rows, tr


def _to_slab(flat, rows):
    """Pad a flat vector with zeros and view it as a lane-dense (rows, LANES) slab."""
    total = flat.shape[0]
    padded = rows * _LANES
    if padded != total:
        flat = jnp.pad(flat, (0, padded - total))
    return flat.reshape(rows, _LANES)


# --------------------------- pallas wrappers ----------------------------------

def _fwd_slab(x2d, tr):
    rows, lanes = x2d.shape
    nbytes = x2d.size * x2d.dtype.itemsize
    return pl.pallas_call(
        _ewgs_fwd_kernel,
        out_shape=jax.ShapeDtypeStruct(x2d.shape, x2d.dtype),
        grid=(rows // tr,),
        in_specs=[pl.BlockSpec((tr, lanes), lambda i: (i, 0))],
        out_specs=pl.BlockSpec((tr, lanes), lambda i: (i, 0)),
        compiler_params=pltpu.CompilerParams(
            dimension_semantics=("parallel",)),
        cost_estimate=pl.CostEstimate(
            flops=x2d.size, transcendentals=0, bytes_accessed=2 * nbytes),
    )(x2d)


def _bwd_slab(delta_arr, x2d, g2d, tr):
    rows, lanes = g2d.shape
    nbytes = g2d.size * g2d.dtype.itemsize
    return pl.pallas_call(
        _ewgs_bwd_kernel,
        out_shape=jax.ShapeDtypeStruct(g2d.shape, g2d.dtype),
        grid=(rows // tr,),
        in_specs=[
            pl.BlockSpec(memory_space=pltpu.MemorySpace.SMEM),   # scalar delta
            pl.BlockSpec((tr, lanes), lambda i: (i, 0)),         # primal x
            pl.BlockSpec((tr, lanes), lambda i: (i, 0)),         # upstream grad
        ],
        out_specs=pl.BlockSpec((tr, lanes), lambda i: (i, 0)),
        compiler_params=pltpu.CompilerParams(
            dimension_semantics=("parallel",)),
        cost_estimate=pl.CostEstimate(
            flops=4 * g2d.size, transcendentals=0, bytes_accessed=3 * nbytes),
    )(delta_arr, x2d, g2d)


# ------------------------ EWGSDiscretizer module ------------------------------

@partial(jax.custom_vjp, nondiff_argnums=(1,))
def ewgs_discretize(x, scaling_factor=0.2):
    """EWGSDiscretizer.forward: y = round(x), with EWGS custom gradient."""
    y, _ = _ewgs_fwd(x, scaling_factor)
    return y


def _ewgs_fwd(x, scaling_factor):
    orig_shape = x.shape
    flat = x.reshape(-1)
    total = flat.shape[0]
    rows, tr = _plan(total)
    y2d = _fwd_slab(_to_slab(flat, rows), tr)
    y = y2d.reshape(-1)[:total].reshape(orig_shape)
    return y, x          # save primal x; diff recomputed in the backward kernel


def _ewgs_bwd(scaling_factor, x_res, g):
    orig_shape = g.shape
    total = g.size
    rows, tr = _plan(total)
    g2d = _to_slab(g.reshape(-1), rows)
    x2d = _to_slab(x_res.reshape(-1), rows)
    delta_arr = jnp.full((1,), scaling_factor, dtype=g.dtype)
    gx2d = _bwd_slab(delta_arr, x2d, g2d, tr)
    gx = gx2d.reshape(-1)[:total].reshape(orig_shape)
    return (gx,)


ewgs_discretize.defvjp(_ewgs_fwd, _ewgs_bwd)


class EWGSDiscretizer:
    """JAX/Pallas mirror of the PyTorch EWGSDiscretizer module."""

    def __init__(self, scaling_factor=0.2):
        # registered buffer in the torch module; kept as a plain float here
        # (its gradient is None in the torch backward anyway).
        self.scaling_factor = float(scaling_factor)

    def __call__(self, x):
        return ewgs_discretize(x, self.scaling_factor)


# ----------------------------------- main --------------------------------------

if __name__ == "__main__":
    key = jax.random.PRNGKey(0)
    k1, k2 = jax.random.split(key)

    # NCHW input, small shapes: batch=2, channels=4, spatial=16x16
    x = jax.random.normal(k1, (2, 4, 16, 16), dtype=jnp.float32) * 3.0

    module = EWGSDiscretizer(scaling_factor=0.2)

    # Forward pass through the Pallas kernel.
    y = jax.block_until_ready(module(x))
    assert jnp.allclose(y, jnp.round(x)), "forward mismatch vs jnp.round"

    # Backward pass (Pallas kernel) against the analytical EWGS gradient.
    out, vjp_fn = jax.vjp(module, x)
    g = jax.random.normal(k2, x.shape, dtype=jnp.float32)
    (gx,) = vjp_fn(g)
    gx = jax.block_until_ready(gx)
    gx_ref = g * (1.0 + 0.2 * jnp.sign(g) * (x - jnp.round(x)))
    assert jnp.allclose(gx, gx_ref, rtol=1e-6, atol=1e-6), "backward mismatch"

    # Also exercise end-to-end jax.grad through the custom_vjp.
    grad_fn = jax.grad(lambda inp: jnp.sum(module(inp) * jnp.cos(inp)))
    gfull = jax.block_until_ready(grad_fn(x))
    assert gfull.shape == x.shape and bool(jnp.all(jnp.isfinite(gfull)))

    print("KERNEL_OK")
</pallas_src>

<mosaic_0001>
module attributes {stable_mosaic.version = 11 : i64} {
  func.func @_ewgs_fwd_kernel(%arg0: i32, %arg1: memref<8x1024xf32, #tpu.memory_space<vmem>>, %arg2: memref<8x1024xf32, #tpu.memory_space<vmem>>) attributes {dimension_semantics = [#tpu.dimension_semantics<parallel>], iteration_bounds = array<i64: 1>, scalar_prefetch = 0 : i64, scratch_operands = 0 : i64, tpu.core_type = #tpu.core_type<tc>, window_params = [{transform_indices = @transform_0, window_bounds = array<i64: 8, 1024>}, {transform_indices = @transform_1, window_bounds = array<i64: 8, 1024>}]} {
    %c0 = arith.constant 0 : index
    %c0_0 = arith.constant 0 : index
    %0 = vector.load %arg1[%c0, %c0_0] : memref<8x1024xf32, #tpu.memory_space<vmem>>, vector<8x1024xf32>
    %1 = math.roundeven %0 : vector<8x1024xf32>
    %c0_1 = arith.constant 0 : index
    %c0_2 = arith.constant 0 : index
    %2 = vector.load %arg2[%c0_1, %c0_2] : memref<8x1024xf32, #tpu.memory_space<vmem>>, vector<8x1024xf32>
    tpu.vector_store %arg2[%c0_1, %c0_2], %1 {strides = array<i32>} : memref<8x1024xf32, #tpu.memory_space<vmem>>, vector<8x1024xf32>,
    return
  }
  func.func @transform_0(%arg0: i32) -> (i32, i32) {
    %c0_i32 = arith.constant 0 : i32
    %c0_i32_0 = arith.constant 0 : i32
    return %arg0, %c0_i32 : i32, i32
  }
  func.func @transform_1(%arg0: i32) -> (i32, i32) {
    %c0_i32 = arith.constant 0 : i32
    %c0_i32_0 = arith.constant 0 : i32
    return %arg0, %c0_i32 : i32, i32
  }
}

</mosaic_0001>

<bundles_post_ra>
// kernel: tpu_custom_call.1
= control target key start
LH: loop header
LB: loop body
LE: loop exit
PB: predicated region body
PF: predicated region fallthrough
CT: control target
= control target key end

     0   :  { %6 = vsyncpa [#allocation3], 0  ;;  %s230_s0 = inlined_call_operand.hbm [shape: f32[8,1024], index: 0, kind: input, shape index: {}]   ;;  %s231_s1 = inlined_call_operand.hbm [shape: f32[8,1024], index: 1, kind: output, shape index: {}]  }
   0x1   :  { %7 = vsyncpa [#allocation4], 0  ;;  %s13_s8 = sshll.u32 %s230_s0, 4  ;;  %s182_s9 = smov [#allocation2]   ;;  %s14_s8 = int_to_ptr.hbm [resolvable:$true] %s13_s8 }
   0x2   :  { %s15_s10 = sshll.u32 %s182_s9, 4  ;;  %s16_s10 = int_to_ptr.vmem [resolvable:$true] %s15_s10 }
   0x3   :  { %18 = dma.hbm_to_vmem [thread:$0]  %s14_s8, 1024, %s16_s10, [#allocation3]  }
   0x4   :  { %178 = dma.done.wait [#allocation3], 1024  }
   0x5   :  { %179 = vsyncadd [#allocation3], 4294966272  ;;  %v23_v0 = vld [vmem:[#allocation2] sm:$0xff]  ;;  %v24_v1 = vld [vmem:[#allocation2 + $0x8] sm:$0xff]  ;;  %s183_s0 = smov [#allocation5]   ;;  %s54_s14 = sshll.u32 %s231_s1, 4  ;;  %s55_s14 = int_to_ptr.hbm [resolvable:$true] %s54_s14 }
   0x6   :  { %v25_v2 = vld [vmem:[#allocation2 + $0x10] sm:$0xff]  ;;  %v64_v3 = vand.u32 2147483647, %v23_v0  ;;  %v66_v4 = vcvt.f32.s32 %v23_v0  ;;  %v72_v5 = vand.u32 2147483647, %v24_v1  ;;  %v74_v6 = vcvt.f32.s32 %v24_v1  ;;  %v26_v9 = vld [vmem:[#allocation2 + $0x18] sm:$0xff] }
   0x7   :  { %v80_v7 = vand.u32 2147483647, %v25_v2  ;;  %v82_v8 = vcvt.f32.s32 %v25_v2  ;;  %v69_v12 = vand.u32 2147483648, %v23_v0  ;;  %v77_v13 = vand.u32 2147483648, %v24_v1  ;;  %v27_v14 = vld [vmem:[#allocation2 + $0x20] sm:$0xff]  ;;  %v28_v27 = vld [vmem:[#allocation2 + $0x28] sm:$0xff] }
   0x8   :  { %vm197_vm0 = vcmp.lt.f32.partialorder %v64_v3, 8388608.0  ;;  %v67_v11 = vcvt.s32.f32 %v66_v4  ;;  %v75_v15 = vcvt.s32.f32 %v74_v6  ;;  %v85_v17 = vand.u32 2147483648, %v25_v2  ;;  %v29_v36 = vld [vmem:[#allocation2 + $0x30] sm:$0xff]  ;;  %v30_v41 = vld [vmem:[#allocation2 + $0x38] sm:$0xff]  ;;  %s52_s11 = sshll.u32 %s183_s0, 4  ;;  %s53_s11 = int_to_ptr.vmem [resolvable:$true] %s52_s11 }
   0x9   :  { %v83_v16 = vcvt.s32.f32 %v82_v8  ;;  %v88_v18 = vand.u32 2147483647, %v26_v9  ;;  %vm201_vm1 = vcmp.lt.f32.partialorder %v72_v5, 8388608.0  ;;  %v90_v21 = vcvt.f32.s32 %v26_v9 }
   0xa   :  { %v68_v19 = vand.u32 2147483647, %v67_v11  ;;  %v96_v22 = vand.u32 2147483647, %v27_v14  ;;  %v76_v23 = vand.u32 2147483647, %v75_v15  ;;  %v98_v26 = vcvt.f32.s32 %v27_v14 }
   0xb   :  { %vm205_vm2 = vcmp.lt.f32.partialorder %v80_v7, 8388608.0  ;;  %v84_v25 = vand.u32 2147483647, %v83_v16  ;;  %vm209_vm3 = vcmp.lt.f32.partialorder %v88_v18, 8388608.0  ;;  %v91_v30 = vcvt.s32.f32 %v90_v21 }
   0xc   :  { %v70_v28 = vor.u32 %v69_v12, %v68_v19  ;;  %v93_v31 = vand.u32 2147483648, %v26_v9  ;;  %v78_v32 = vor.u32 %v77_v13, %v76_v23  ;;  %v99_v34 = vcvt.s32.f32 %v98_v26 }
   0xd   :  { %v86_v33 = vor.u32 %v85_v17, %v84_v25  ;;  %v101_v35 = vand.u32 2147483648, %v27_v14  ;;  %v92_v38 = vand.u32 2147483647, %v91_v30  ;;  %vm215_vm4 = vcmp.lt.f32.partialorder %v96_v22, 8388608.0 }
   0xe   :  { %v71_v37 = vsel %vm197_vm0, %v70_v28, %v23_v0  ;;  %v106_v40 = vcvt.f32.s32 %v28_v27  ;;  %v79_v42 = vsel %vm201_vm1, %v78_v32, %v24_v1  ;;  %v100_v44 = vand.u32 2147483647, %v99_v34 }
   0xf   :  { %39 = vst [vmem:[#allocation5] sm:$0xff] %v71_v37  ;;  %v87_v43 = vsel %vm205_vm2, %v86_v33, %v25_v2  ;;  %v104_v45 = vand.u32 2147483647, %v28_v27  ;;  %v94_v46 = vor.u32 %v93_v31, %v92_v38  ;;  %v109_v48 = vand.u32 2147483648, %v28_v27 }
  0x10   :  { %40 = vst [vmem:[#allocation5 + $0x8] sm:$0xff] %v79_v42  ;;  %v107_v47 = vcvt.s32.f32 %v106_v40  ;;  %v114_v49 = vcvt.f32.s32 %v29_v36  ;;  %v102_v50 = vor.u32 %v101_v35, %v100_v44  ;;  %v112_v51 = vand.u32 2147483647, %v29_v36 }
  0x11   :  { %41 = vst [vmem:[#allocation5 + $0x10] sm:$0xff] %v87_v43  ;;  %v117_v52 = vand.u32 2147483648, %v29_v36  ;;  %v122_v53 = vcvt.f32.s32 %v30_v41  ;;  %v95_v54 = vsel %vm209_vm3, %v94_v46, %v26_v9  ;;  %v120_v57 = vand.u32 2147483647, %v30_v41 }
  0x12   :  { %v108_v55 = vand.u32 2147483647, %v107_v47  ;;  %v115_v56 = vcvt.s32.f32 %v114_v49  ;;  %42 = vst [vmem:[#allocation5 + $0x18] sm:$0xff] %v95_v54  ;;  %v103_v58 = vsel %vm215_vm4, %v102_v50, %v27_v14  ;;  %vm105_vm5 = vcmp.lt.f32.partialorder %v104_v45, 8388608.0 }
  0x13   :  { %v123_v59 = vcvt.s32.f32 %v122_v53  ;;  %v125_v60 = vand.u32 2147483648, %v30_v41  ;;  %43 = vst [vmem:[#allocation5 + $0x20] sm:$0xff] %v103_v58  ;;  %vm113_vm6 = vcmp.lt.f32.partialorder %v112_v51, 8388608.0  ;;  %vm121_vm7 = vcmp.lt.f32.partialorder %v120_v57, 8388608.0 }
  0x14   :  { %v110_v61 = vor.u32 %v109_v48, %v108_v55  ;;  %v116_v62 = vand.u32 2147483647, %v115_v56 }
  0x15   :  { %v124_v63 = vand.u32 2147483647, %v123_v59 }
  0x16   :  { %v111_v0 = vsel %vm105_vm5, %v110_v61, %v28_v27  ;;  %v118_v1 = vor.u32 %v117_v52, %v116_v62 }
  0x17   :  { %44 = vst [vmem:[#allocation5 + $0x28] sm:$0xff] %v111_v0  ;;  %v126_v2 = vor.u32 %v125_v60, %v124_v63 }
  0x18   :  { %v119_v3 = vsel %vm113_vm6, %v118_v1, %v29_v36 }
  0x19   :  { %45 = vst [vmem:[#allocation5 + $0x30] sm:$0xff] %v119_v3  ;;  %v127_v4 = vsel %vm121_vm7, %v126_v2, %v30_v41 }
  0x1a   :  { %46 = vst [vmem:[#allocation5 + $0x38] sm:$0xff] %v127_v4 }
  0x1b   :  { %57 = dma.vmem_to_hbm [thread:$0]  %s53_s11, 1024, %s55_s14, [#allocation4]  }
  0x1c   :  { %180 = dma.done.wait [#allocation4], 1024  }
  0x1d   :  { %181 = vsyncadd [#allocation4], 4294966272 }
  0x1e   :  { %62 = vsyncpa [#allocation3], 1 }
  0x1f   :  { %63 = vsyncpa [#allocation4], 1 }

</bundles_post_ra>
